<compile_context>
chip_gen: v6e
topology: v6e:2x2x1
jax: 0.10.0
libtpu: 0.0.40
codegen_flags: <defaults>
</compile_context>

<pallas_src>
import jax
import jax.numpy as jnp
from jax.experimental import pallas as pl
from jax.experimental.pallas import tpu as pltpu

LANE = 128       # padded feature width (full vreg lane row)
NUM_MATS = 10    # 10 Linear layers (AE_X1: 4, AE_X2: 2, AE_X: 4)


# ----------------------------- Pallas kernel ------------------------------ #

def _merger_kernel(x_ref, w_ref, b_ref, ocat_ref, ores_ref):
    # x_ref: (TB, 128) packed input, lanes 0:60 = x1, 60:100 = x2, rest 0.
    # w_ref: (10, 128, 128) padded (in, out) weights, VMEM-resident.
    # b_ref: (10, 1, 128)   padded biases.
    def lin(x, i):
        return jnp.dot(x, w_ref[i], preferred_element_type=jnp.float32) + b_ref[i]

    xin = x_ref[...]

    # ---- AE_X1: 60->40->20->40->60 (reads lanes 0:60, writes lanes 0:60) ----
    h = lin(xin, 0)
    h = lin(h, 1)
    h = lin(h, 2)
    x1o = lin(h, 3)                      # x1 reconstruction, lanes 0:60

    # ---- AE_X2: 40->15->40 (encoder row-shifted to read lanes 60:100,
    #                         decoder col-shifted to write lanes 60:100) ----
    g = lin(xin, 4)                      # lanes 0:15
    x2s = lin(g, 5)                      # x2 reconstruction, lanes 60:100

    # hstack([x1o, x2o]) is just an add of disjoint lane ranges.
    xcat = x1o + x2s                     # lanes 0:100 valid, 100:128 zero

    # ---- AE_X: 100->75->25->75->100, residual add ----
    e = lin(xcat, 6)
    e = lin(e, 7)
    d = lin(e, 8)
    d = lin(d, 9)

    ocat_ref[...] = xcat.astype(ocat_ref.dtype)           # carries x1o & x2o
    ores_ref[...] = (xcat + d).astype(ores_ref.dtype)     # x + AE_X(x)


# --------------------------- One-time param prep --------------------------- #

def prepare_params(params):
    """params: list of 10 (W, b) in PyTorch layout (out, in)/(out,) for layers
       AE_X1(4), AE_X2(2), AE_X(4).  Returns packed, padded weight/bias stacks.
       Call once; keep the result resident (no per-call transforms)."""
    def pad_w(w, row_offset=0, col_offset=0):
        wt = jnp.transpose(w).astype(jnp.float32)          # (in, out)
        full = jnp.zeros((LANE, LANE), jnp.float32)
        return full.at[row_offset: row_offset + wt.shape[0],
                       col_offset: col_offset + wt.shape[1]].set(wt)

    def pad_b(b, offset=0):
        full = jnp.zeros((1, LANE), jnp.float32)
        return full.at[0, offset: offset + b.shape[0]].set(b.astype(jnp.float32))

    (w1, b1), (w2, b2), (w3, b3), (w4, b4), (w5, b5), (w6, b6), \
        (w7, b7), (w8, b8), (w9, b9), (w10, b10) = params

    x1_dim = w4.shape[0]                  # 60: where x2's lanes start

    ws = [pad_w(w1), pad_w(w2), pad_w(w3), pad_w(w4),
          pad_w(w5, row_offset=x1_dim),   # AE_X2 encoder reads lanes 60:100
          pad_w(w6, col_offset=x1_dim),   # AE_X2 decoder writes lanes 60:100
          pad_w(w7), pad_w(w8), pad_w(w9), pad_w(w10)]
    bs = [pad_b(b1), pad_b(b2), pad_b(b3), pad_b(b4),
          pad_b(b5),
          pad_b(b6, offset=x1_dim),
          pad_b(b7), pad_b(b8), pad_b(b9), pad_b(b10)]

    return jnp.stack(ws), jnp.stack(bs)   # (10,128,128), (10,1,128)


# ------------------------------- Wrapper ----------------------------------- #

def autoencoder_merger(x1, x2, packed_params, tile_b=512):
    """x1: (B, 60), x2: (B, 40).  packed_params from prepare_params().
       Returns (x1_recon (B,60), x2_recon (B,40), merged+residual (B,100))."""
    w_packed, b_packed = packed_params
    B = x1.shape[0]
    d1, d2 = x1.shape[1], x2.shape[1]

    # Batch tile: multiple of 8 sublanes; sweepable up to ~512-2048 rows.
    b8 = ((B + 7) // 8) * 8
    tb = min(tile_b, b8)
    bp = pl.cdiv(b8, tb) * tb
    grid = (bp // tb,)

    # Single lane-dense packed input (padding lanes must be 0 for exactness).
    xin = jnp.concatenate([x1.astype(jnp.float32), x2.astype(jnp.float32)], axis=-1)
    xin = jnp.pad(xin, ((0, bp - B), (0, LANE - (d1 + d2))))

    act_spec = pl.BlockSpec((tb, LANE), lambda i: (i, 0))
    w_spec = pl.BlockSpec((NUM_MATS, LANE, LANE), lambda i: (0, 0, 0))  # VMEM-resident
    b_spec = pl.BlockSpec((NUM_MATS, 1, LANE), lambda i: (0, 0, 0))     # VMEM-resident

    out_shapes = (jax.ShapeDtypeStruct((bp, LANE), jnp.float32),
                  jax.ShapeDtypeStruct((bp, LANE), jnp.float32))

    ocat, ores = pl.pallas_call(
        _merger_kernel,
        out_shape=out_shapes,
        grid=grid,
        in_specs=[act_spec, w_spec, b_spec],
        out_specs=(act_spec, act_spec),
        compiler_params=pltpu.CompilerParams(dimension_semantics=("parallel",)),
    )(xin, w_packed, b_packed)

    # x1_recon and x2_recon live in disjoint lanes of the pre-residual concat.
    return ocat[:B, :d1], ocat[:B, d1:d1 + d2], ores[:B, :d1 + d2]


# -------------------------- Parameter construction ------------------------- #

def init_linear(key, out_features, in_features):
    """PyTorch nn.Linear default init: U(-1/sqrt(in), 1/sqrt(in))."""
    kw, kb = jax.random.split(key)
    bound = 1.0 / (in_features ** 0.5)
    w = jax.random.uniform(kw, (out_features, in_features), jnp.float32,
                           minval=-bound, maxval=bound)
    b = jax.random.uniform(kb, (out_features,), jnp.float32,
                           minval=-bound, maxval=bound)
    return w, b


def build_params(key):
    layer_dims = [
        # AE_X1
        (40, 60), (20, 40), (40, 20), (60, 40),
        # AE_X2
        (15, 40), (40, 15),
        # AE_X
        (75, 100), (25, 75), (75, 25), (100, 75),
    ]
    keys = jax.random.split(key, len(layer_dims))
    return [init_linear(k, o, i) for k, (o, i) in zip(keys, layer_dims)]


# ------------------------------ Reference ---------------------------------- #

def reference_forward(x1, x2, params):
    def lin(x, w, b):
        return x @ w.T + b

    p = params
    h = lin(x1, *p[0]); h = lin(h, *p[1]); h = lin(h, *p[2]); x1o = lin(h, *p[3])
    g = lin(x2, *p[4]); x2o = lin(g, *p[5])
    x = jnp.concatenate([x1o, x2o], axis=-1)
    e = lin(x, *p[6]); e = lin(e, *p[7]); d = lin(e, *p[8]); d = lin(d, *p[9])
    return x1o, x2o, x + d


# --------------------------------- Main ------------------------------------ #

if __name__ == "__main__":
    key = jax.random.PRNGKey(0)
    k_params, k_x1, k_x2 = jax.random.split(key, 3)

    B = 8
    x1 = jax.random.normal(k_x1, (B, 60), jnp.float32)
    x2 = jax.random.normal(k_x2, (B, 40), jnp.float32)

    params = build_params(k_params)
    packed = prepare_params(params)          # one-time prep (not per call)

    out = autoencoder_merger(x1, x2, packed)
    out = jax.block_until_ready(out)

    ref = reference_forward(x1, x2, params)
    for o, r in zip(out, ref):
        assert o.shape == r.shape and o.dtype == r.dtype, (o.shape, r.shape)
        assert jnp.allclose(o, r, rtol=1e-4, atol=1e-4), "mismatch vs reference"

    print("KERNEL_OK")
</pallas_src>

<mosaic_0001>
module attributes {stable_mosaic.version = 11 : i64} {
  func.func @_merger_kernel(%arg0: i32, %arg1: memref<8x128xf32, #tpu.memory_space<vmem>>, %arg2: memref<10x128x128xf32, #tpu.memory_space<vmem>>, %arg3: memref<10x1x128xf32, #tpu.memory_space<vmem>>, %arg4: memref<8x128xf32, #tpu.memory_space<vmem>>, %arg5: memref<8x128xf32, #tpu.memory_space<vmem>>) attributes {dimension_semantics = [#tpu.dimension_semantics<parallel>], iteration_bounds = array<i64: 1>, scalar_prefetch = 0 : i64, scratch_operands = 0 : i64, tpu.core_type = #tpu.core_type<tc>, window_params = [{transform_indices = @transform_0, window_bounds = array<i64: 8, 128>}, {pipeline_mode = #tpu.pipeline_mode<synchronous>, transform_indices = @transform_1, window_bounds = array<i64: 10, 128, 128>}, {pipeline_mode = #tpu.pipeline_mode<synchronous>, transform_indices = @transform_2, window_bounds = array<i64: 10, 1, 128>}, {transform_indices = @transform_3, window_bounds = array<i64: 8, 128>}, {transform_indices = @transform_4, window_bounds = array<i64: 8, 128>}]} {
    %c0 = arith.constant 0 : index
    %c0_0 = arith.constant 0 : index
    %0 = vector.load %arg1[%c0, %c0_0] : memref<8x128xf32, #tpu.memory_space<vmem>>, vector<8x128xf32>
    %c0_1 = arith.constant 0 : index
    %c0_2 = arith.constant 0 : index
    %c0_3 = arith.constant 0 : index
    %1 = vector.load %arg2[%c0_1, %c0_2, %c0_3] : memref<10x128x128xf32, #tpu.memory_space<vmem>>, vector<1x128x128xf32>
    %2 = vector.shape_cast %1 : vector<1x128x128xf32> to vector<128x128xf32>
    %cst = arith.constant dense<0.000000e+00> : vector<8x128xf32>
    %3 = tpu.matmul %0, %2, %cst {dimension_numbers = #tpu.dot_dimension_numbers<[1], [0], [0], [1], [0, 0, 1, 1], [], []>} : vector<8x128xf32>, vector<128x128xf32>, vector<8x128xf32> -> vector<8x128xf32>
    %c0_4 = arith.constant 0 : index
    %c0_5 = arith.constant 0 : index
    %c0_6 = arith.constant 0 : index
    %4 = vector.load %arg3[%c0_4, %c0_5, %c0_6] : memref<10x1x128xf32, #tpu.memory_space<vmem>>, vector<1x1x128xf32>
    %5 = vector.shape_cast %4 : vector<1x1x128xf32> to vector<1x128xf32>
    %6 = vector.broadcast %5 : vector<1x128xf32> to vector<8x128xf32>
    %7 = arith.addf %3, %6 : vector<8x128xf32>
    %c1 = arith.constant 1 : index
    %c0_7 = arith.constant 0 : index
    %c0_8 = arith.constant 0 : index
    %8 = vector.load %arg2[%c1, %c0_7, %c0_8] : memref<10x128x128xf32, #tpu.memory_space<vmem>>, vector<1x128x128xf32>
    %9 = vector.shape_cast %8 : vector<1x128x128xf32> to vector<128x128xf32>
    %cst_9 = arith.constant dense<0.000000e+00> : vector<8x128xf32>
    %10 = tpu.matmul %7, %9, %cst_9 {dimension_numbers = #tpu.dot_dimension_numbers<[1], [0], [0], [1], [0, 0, 1, 1], [], []>} : vector<8x128xf32>, vector<128x128xf32>, vector<8x128xf32> -> vector<8x128xf32>
    %c1_10 = arith.constant 1 : index
    %c0_11 = arith.constant 0 : index
    %c0_12 = arith.constant 0 : index
    %11 = vector.load %arg3[%c1_10, %c0_11, %c0_12] : memref<10x1x128xf32, #tpu.memory_space<vmem>>, vector<1x1x128xf32>
    %12 = vector.shape_cast %11 : vector<1x1x128xf32> to vector<1x128xf32>
    %13 = vector.broadcast %12 : vector<1x128xf32> to vector<8x128xf32>
    %14 = arith.addf %10, %13 : vector<8x128xf32>
    %c2 = arith.constant 2 : index
    %c0_13 = arith.constant 0 : index
    %c0_14 = arith.constant 0 : index
    %15 = vector.load %arg2[%c2, %c0_13, %c0_14] : memref<10x128x128xf32, #tpu.memory_space<vmem>>, vector<1x128x128xf32>
    %16 = vector.shape_cast %15 : vector<1x128x128xf32> to vector<128x128xf32>
    %cst_15 = arith.constant dense<0.000000e+00> : vector<8x128xf32>
    %17 = tpu.matmul %14, %16, %cst_15 {dimension_numbers = #tpu.dot_dimension_numbers<[1], [0], [0], [1], [0, 0, 1, 1], [], []>} : vector<8x128xf32>, vector<128x128xf32>, vector<8x128xf32> -> vector<8x128xf32>
    %c2_16 = arith.constant 2 : index
    %c0_17 = arith.constant 0 : index
    %c0_18 = arith.constant 0 : index
    %18 = vector.load %arg3[%c2_16, %c0_17, %c0_18] : memref<10x1x128xf32, #tpu.memory_space<vmem>>, vector<1x1x128xf32>
    %19 = vector.shape_cast %18 : vector<1x1x128xf32> to vector<1x128xf32>
    %20 = vector.broadcast %19 : vector<1x128xf32> to vector<8x128xf32>
    %21 = arith.addf %17, %20 : vector<8x128xf32>
    %c3 = arith.constant 3 : index
    %c0_19 = arith.constant 0 : index
    %c0_20 = arith.constant 0 : index
    %22 = vector.load %arg2[%c3, %c0_19, %c0_20] : memref<10x128x128xf32, #tpu.memory_space<vmem>>, vector<1x128x128xf32>
    %23 = vector.shape_cast %22 : vector<1x128x128xf32> to vector<128x128xf32>
    %cst_21 = arith.constant dense<0.000000e+00> : vector<8x128xf32>
    %24 = tpu.matmul %21, %23, %cst_21 {dimension_numbers = #tpu.dot_dimension_numbers<[1], [0], [0], [1], [0, 0, 1, 1], [], []>} : vector<8x128xf32>, vector<128x128xf32>, vector<8x128xf32> -> vector<8x128xf32>
    %c3_22 = arith.constant 3 : index
    %c0_23 = arith.constant 0 : index
    %c0_24 = arith.constant 0 : index
    %25 = vector.load %arg3[%c3_22, %c0_23, %c0_24] : memref<10x1x128xf32, #tpu.memory_space<vmem>>, vector<1x1x128xf32>
    %26 = vector.shape_cast %25 : vector<1x1x128xf32> to vector<1x128xf32>
    %27 = vector.broadcast %26 : vector<1x128xf32> to vector<8x128xf32>
    %28 = arith.addf %24, %27 : vector<8x128xf32>
    %c4 = arith.constant 4 : index
    %c0_25 = arith.constant 0 : index
    %c0_26 = arith.constant 0 : index
    %29 = vector.load %arg2[%c4, %c0_25, %c0_26] : memref<10x128x128xf32, #tpu.memory_space<vmem>>, vector<1x128x128xf32>
    %30 = vector.shape_cast %29 : vector<1x128x128xf32> to vector<128x128xf32>
    %cst_27 = arith.constant dense<0.000000e+00> : vector<8x128xf32>
    %31 = tpu.matmul %0, %30, %cst_27 {dimension_numbers = #tpu.dot_dimension_numbers<[1], [0], [0], [1], [0, 0, 1, 1], [], []>} : vector<8x128xf32>, vector<128x128xf32>, vector<8x128xf32> -> vector<8x128xf32>
    %c4_28 = arith.constant 4 : index
    %c0_29 = arith.constant 0 : index
    %c0_30 = arith.constant 0 : index
    %32 = vector.load %arg3[%c4_28, %c0_29, %c0_30] : memref<10x1x128xf32, #tpu.memory_space<vmem>>, vector<1x1x128xf32>
    %33 = vector.shape_cast %32 : vector<1x1x128xf32> to vector<1x128xf32>
    %34 = vector.broadcast %33 : vector<1x128xf32> to vector<8x128xf32>
    %35 = arith.addf %31, %34 : vector<8x128xf32>
    %c5 = arith.constant 5 : index
    %c0_31 = arith.constant 0 : index
    %c0_32 = arith.constant 0 : index
    %36 = vector.load %arg2[%c5, %c0_31, %c0_32] : memref<10x128x128xf32, #tpu.memory_space<vmem>>, vector<1x128x128xf32>
    %37 = vector.shape_cast %36 : vector<1x128x128xf32> to vector<128x128xf32>
    %cst_33 = arith.constant dense<0.000000e+00> : vector<8x128xf32>
    %38 = tpu.matmul %35, %37, %cst_33 {dimension_numbers = #tpu.dot_dimension_numbers<[1], [0], [0], [1], [0, 0, 1, 1], [], []>} : vector<8x128xf32>, vector<128x128xf32>, vector<8x128xf32> -> vector<8x128xf32>
    %c5_34 = arith.constant 5 : index
    %c0_35 = arith.constant 0 : index
    %c0_36 = arith.constant 0 : index
    %39 = vector.load %arg3[%c5_34, %c0_35, %c0_36] : memref<10x1x128xf32, #tpu.memory_space<vmem>>, vector<1x1x128xf32>
    %40 = vector.shape_cast %39 : vector<1x1x128xf32> to vector<1x128xf32>
    %41 = vector.broadcast %40 : vector<1x128xf32> to vector<8x128xf32>
    %42 = arith.addf %38, %41 : vector<8x128xf32>
    %43 = arith.addf %28, %42 : vector<8x128xf32>
    %c6 = arith.constant 6 : index
    %c0_37 = arith.constant 0 : index
    %c0_38 = arith.constant 0 : index
    %44 = vector.load %arg2[%c6, %c0_37, %c0_38] : memref<10x128x128xf32, #tpu.memory_space<vmem>>, vector<1x128x128xf32>
    %45 = vector.shape_cast %44 : vector<1x128x128xf32> to vector<128x128xf32>
    %cst_39 = arith.constant dense<0.000000e+00> : vector<8x128xf32>
    %46 = tpu.matmul %43, %45, %cst_39 {dimension_numbers = #tpu.dot_dimension_numbers<[1], [0], [0], [1], [0, 0, 1, 1], [], []>} : vector<8x128xf32>, vector<128x128xf32>, vector<8x128xf32> -> vector<8x128xf32>
    %c6_40 = arith.constant 6 : index
    %c0_41 = arith.constant 0 : index
    %c0_42 = arith.constant 0 : index
    %47 = vector.load %arg3[%c6_40, %c0_41, %c0_42] : memref<10x1x128xf32, #tpu.memory_space<vmem>>, vector<1x1x128xf32>
    %48 = vector.shape_cast %47 : vector<1x1x128xf32> to vector<1x128xf32>
    %49 = vector.broadcast %48 : vector<1x128xf32> to vector<8x128xf32>
    %50 = arith.addf %46, %49 : vector<8x128xf32>
    %c7 = arith.constant 7 : index
    %c0_43 = arith.constant 0 : index
    %c0_44 = arith.constant 0 : index
    %51 = vector.load %arg2[%c7, %c0_43, %c0_44] : memref<10x128x128xf32, #tpu.memory_space<vmem>>, vector<1x128x128xf32>
    %52 = vector.shape_cast %51 : vector<1x128x128xf32> to vector<128x128xf32>
    %cst_45 = arith.constant dense<0.000000e+00> : vector<8x128xf32>
    %53 = tpu.matmul %50, %52, %cst_45 {dimension_numbers = #tpu.dot_dimension_numbers<[1], [0], [0], [1], [0, 0, 1, 1], [], []>} : vector<8x128xf32>, vector<128x128xf32>, vector<8x128xf32> -> vector<8x128xf32>
    %c7_46 = arith.constant 7 : index
    %c0_47 = arith.constant 0 : index
    %c0_48 = arith.constant 0 : index
    %54 = vector.load %arg3[%c7_46, %c0_47, %c0_48] : memref<10x1x128xf32, #tpu.memory_space<vmem>>, vector<1x1x128xf32>
    %55 = vector.shape_cast %54 : vector<1x1x128xf32> to vector<1x128xf32>
    %56 = vector.broadcast %55 : vector<1x128xf32> to vector<8x128xf32>
    %57 = arith.addf %53, %56 : vector<8x128xf32>
    %c8 = arith.constant 8 : index
    %c0_49 = arith.constant 0 : index
    %c0_50 = arith.constant 0 : index
    %58 = vector.load %arg2[%c8, %c0_49, %c0_50] : memref<10x128x128xf32, #tpu.memory_space<vmem>>, vector<1x128x128xf32>
    %59 = vector.shape_cast %58 : vector<1x128x128xf32> to vector<128x128xf32>
    %cst_51 = arith.constant dense<0.000000e+00> : vector<8x128xf32>
    %60 = tpu.matmul %57, %59, %cst_51 {dimension_numbers = #tpu.dot_dimension_numbers<[1], [0], [0], [1], [0, 0, 1, 1], [], []>} : vector<8x128xf32>, vector<128x128xf32>, vector<8x128xf32> -> vector<8x128xf32>
    %c8_52 = arith.constant 8 : index
    %c0_53 = arith.constant 0 : index
    %c0_54 = arith.constant 0 : index
    %61 = vector.load %arg3[%c8_52, %c0_53, %c0_54] : memref<10x1x128xf32, #tpu.memory_space<vmem>>, vector<1x1x128xf32>
    %62 = vector.shape_cast %61 : vector<1x1x128xf32> to vector<1x128xf32>
    %63 = vector.broadcast %62 : vector<1x128xf32> to vector<8x128xf32>
    %64 = arith.addf %60, %63 : vector<8x128xf32>
    %c9 = arith.constant 9 : index
    %c0_55 = arith.constant 0 : index
    %c0_56 = arith.constant 0 : index
    %65 = vector.load %arg2[%c9, %c0_55, %c0_56] : memref<10x128x128xf32, #tpu.memory_space<vmem>>, vector<1x128x128xf32>
    %66 = vector.shape_cast %65 : vector<1x128x128xf32> to vector<128x128xf32>
    %cst_57 = arith.constant dense<0.000000e+00> : vector<8x128xf32>
    %67 = tpu.matmul %64, %66, %cst_57 {dimension_numbers = #tpu.dot_dimension_numbers<[1], [0], [0], [1], [0, 0, 1, 1], [], []>} : vector<8x128xf32>, vector<128x128xf32>, vector<8x128xf32> -> vector<8x128xf32>
    %c9_58 = arith.constant 9 : index
    %c0_59 = arith.constant 0 : index
    %c0_60 = arith.constant 0 : index
    %68 = vector.load %arg3[%c9_58, %c0_59, %c0_60] : memref<10x1x128xf32, #tpu.memory_space<vmem>>, vector<1x1x128xf32>
    %69 = vector.shape_cast %68 : vector<1x1x128xf32> to vector<1x128xf32>
    %70 = vector.broadcast %69 : vector<1x128xf32> to vector<8x128xf32>
    %71 = arith.addf %67, %70 : vector<8x128xf32>
    %c0_61 = arith.constant 0 : index
    %c0_62 = arith.constant 0 : index
    %72 = vector.load %arg4[%c0_61, %c0_62] : memref<8x128xf32, #tpu.memory_space<vmem>>, vector<8x128xf32>
    tpu.vector_store %arg4[%c0_61, %c0_62], %43 {strides = array<i32>} : memref<8x128xf32, #tpu.memory_space<vmem>>, vector<8x128xf32>,
    %73 = arith.addf %43, %71 : vector<8x128xf32>
    %c0_63 = arith.constant 0 : index
    %c0_64 = arith.constant 0 : index
    %74 = vector.load %arg5[%c0_63, %c0_64] : memref<8x128xf32, #tpu.memory_space<vmem>>, vector<8x128xf32>
    tpu.vector_store %arg5[%c0_63, %c0_64], %73 {strides = array<i32>} : memref<8x128xf32, #tpu.memory_space<vmem>>, vector<8x128xf32>,
    return
  }
  func.func @transform_0(%arg0: i32) -> (i32, i32) {
    %c0_i32 = arith.constant 0 : i32
    %c0_i32_0 = arith.constant 0 : i32
    return %arg0, %c0_i32 : i32, i32
  }
  func.func @transform_1(%arg0: i32) -> (i32, i32, i32) {
    %c0_i32 = arith.constant 0 : i32
    %c0_i32_0 = arith.constant 0 : i32
    %c0_i32_1 = arith.constant 0 : i32
    %c0_i32_2 = arith.constant 0 : i32
    return %c0_i32, %c0_i32_0, %c0_i32_1 : i32, i32, i32
  }
  func.func @transform_2(%arg0: i32) -> (i32, i32, i32) {
    %c0_i32 = arith.constant 0 : i32
    %c0_i32_0 = arith.constant 0 : i32
    %c0_i32_1 = arith.constant 0 : i32
    %c0_i32_2 = arith.constant 0 : i32
    return %c0_i32, %c0_i32_0, %c0_i32_1 : i32, i32, i32
  }
  func.func @transform_3(%arg0: i32) -> (i32, i32) {
    %c0_i32 = arith.constant 0 : i32
    %c0_i32_0 = arith.constant 0 : i32
    return %arg0, %c0_i32 : i32, i32
  }
  func.func @transform_4(%arg0: i32) -> (i32, i32) {
    %c0_i32 = arith.constant 0 : i32
    %c0_i32_0 = arith.constant 0 : i32
    return %arg0, %c0_i32 : i32, i32
  }
}

</mosaic_0001>

<bundles_post_ra>
// kernel: tpu_custom_call.1
= control target key start
LH: loop header
LB: loop body
LE: loop exit
PB: predicated region body
PF: predicated region fallthrough
CT: control target
= control target key end

     0   :  { %10 = vsyncpa [#allocation3], 0  ;;  %s1929_s0 = inlined_call_operand.hbm [shape: f32[8,128], index: 0, kind: input, shape index: {}]   ;;  %s1930_s1 = inlined_call_operand.hbm [shape: f32[10,128,128], index: 1, kind: input, shape index: {}]   ;;  %s1931_s2 = inlined_call_operand.hbm [shape: f32[10,1,128], index: 2, kind: input, shape index: {}]   ;;  %s1932_s3 = inlined_call_operand.hbm [shape: f32[8,128], index: 3, kind: output, shape index: {0}]   ;;  %s1933_s4 = inlined_call_operand.hbm [shape: f32[8,128], index: 4, kind: output, shape index: {1}]  }
   0x1   :  { %11 = vsyncpa [#allocation6], 0 }
   0x2   :  { %12 = vsyncpa [#allocation4], 0 }
   0x3   :  { %13 = vsyncpa [#allocation10], 0  ;;  %s1689_s15 = smov [#allocation5]  }
   0x4   :  { %s29_s16 = sshll.u32 %s1689_s15, 4  ;;  %s30_s16 = int_to_ptr.vmem [resolvable:$true] %s29_s16 }
   0x5   :  { %s1589_s17 = scalar_lea.vmem %s30_s16, 20480  ;;  %p1594_p1 = scmp.lt.s32.totalorder %s30_s16, %s30_s16 }
   0x6   :  { %p1590_p0 = scmp.ne.s32.totalorder %s30_s16, %s1589_s17  ;;  %p1595_p2 = scmp.lt.s32.totalorder %s1589_s17, %s1589_s17 }
   0x8   :  { %p1596_p3 = por %p1595_p2, %p1594_p1 }
   0xa   :  { %p1597_p4 = pnand %p1596_p3, %p1590_p0 }
   0xc   :  { %1600 = shalt.err (!%p1597_p4)
}
   0xd   :  { %s1690_s18 = smov 128   ;;  %s1691_s19 = smov 8  }
   0xe   :  { %35 = dma.hbm_to_vmem [thread:$0]  %s1930_s1, 20480, %s30_s16, [#allocation6], %s1690_s18, %s1690_s18, %s1691_s19  }
   0xf   :  { %s1692_s22 = smov [#allocation2]   ;;  %s1693_s24 = smov [#allocation7]  }
  0x10   :  { %s20_s23 = sshll.u32 %s1692_s22, 4  ;;  %s41_s25 = sshll.u32 %s1693_s24, 4  ;;  %s21_s23 = int_to_ptr.vmem [resolvable:$true] %s20_s23  ;;  %s42_s25 = int_to_ptr.vmem [resolvable:$true] %s41_s25 }
  0x11   :  { %s1609_s26 = scalar_lea.vmem %s21_s23, 128  ;;  %p1614_p6 = scmp.lt.s32.totalorder %s21_s23, %s21_s23 }
  0x12   :  { %p1610_p5 = scmp.ne.s32.totalorder %s21_s23, %s1609_s26  ;;  %p1615_p7 = scmp.lt.s32.totalorder %s1609_s26, %s1609_s26 }
  0x14   :  { %p1616_p8 = por %p1615_p7, %p1614_p6 }
  0x16   :  { %p1617_p9 = pnand %p1616_p8, %p1610_p5 }
  0x18   :  { %1620 = shalt.err (!%p1617_p9)
}
  0x19   :  { %23 = dma.hbm_to_vmem [thread:$0]  %s1929_s0, 128, %s21_s23, [#allocation3]  }
  0x1a   :  { %s1629_s29 = scalar_lea.vmem %s42_s25, 160  ;;  %p1634_p11 = scmp.lt.s32.totalorder %s42_s25, %s42_s25 }
  0x1b   :  { %p1630_p10 = scmp.ne.s32.totalorder %s42_s25, %s1629_s29  ;;  %p1635_p12 = scmp.lt.s32.totalorder %s1629_s29, %s1629_s29 }
  0x1d   :  { %p1636_p13 = por %p1635_p12, %p1634_p11 }
  0x1f   :  { %p1637_p0 = pnand %p1636_p13, %p1630_p10 }
  0x21   :  { %1640 = shalt.err (!%p1637_p0)
}
  0x22   :  { %s1694_s1 = smov 16   ;;  %s1695_s30 = smov 1  }
  0x23   :  { %47 = dma.hbm_to_vmem [thread:$0]  %s1931_s2, 160, %s42_s25, [#allocation6], %s1694_s1, %s1694_s1, %s1695_s30  }
  0x24   :  { %1681 = dma.done.wait [#allocation3], 128  }
  0x25   :  { %1682 = vsyncadd [#allocation3], 4294967168 }
  0x26   :  { %1683 = dma.done.wait [#allocation6], 20640  }
  0x27   :  { %1684 = vsyncadd [#allocation6], 4294946656  ;;  %v1696_v0 = vmov 0.0   ;;  %vm1697_vm0 = vmmov 0   ;;  %v73_v1 = vld [vmem:[#allocation5 + $0x78] sm:$0xff]  ;;  %v72_v2 = vld [vmem:[#allocation5 + $0x70] sm:$0xff] }
  0x28   :  { %1220 = vmatprep.subr.mxu0 %v1696_v0  ;;  %1252 = vmatprep.mubr.msk.f32.mxu0 %vm1697_vm0, %v1696_v0  ;;  %v71_v3 = vld [vmem:[#allocation5 + $0x68] sm:$0xff]  ;;  %v70_v4 = vld [vmem:[#allocation5 + $0x60] sm:$0xff]  ;;  %v167_v5 = vld [vmem:[#allocation5 + $0xf8] sm:$0xff]  ;;  %s1698_s0 = smov [#allocation8]  }
  0x29   :  { %1255 = vmatprep.subr.mxu1 %v1696_v0  ;;  %1287 = vmatprep.mubr.msk.f32.mxu1 %vm1697_vm0, %v1696_v0  ;;  %v69_v6 = vld [vmem:[#allocation5 + $0x58] sm:$0xff]  ;;  %v166_v7 = vld [vmem:[#allocation5 + $0xf0] sm:$0xff]  ;;  %v165_v8 = vld [vmem:[#allocation5 + $0xe8] sm:$0xff]  ;;  %s1016_s2 = sshll.u32 %s1698_s0, 4  ;;  %s1017_s2 = int_to_ptr.vmem [resolvable:$true] %s1016_s2 }
  0x2a   :  { %1221 = vmatpush3.msra.mxu0 %v73_v1  ;;  %1256 = vmatpush3.msra.mxu1 %v167_v5  ;;  %v68_v9 = vld [vmem:[#allocation5 + $0x50] sm:$0xff]  ;;  %v164_v10 = vld [vmem:[#allocation5 + $0xe0] sm:$0xff]  ;;  %v67_v11 = vld [vmem:[#allocation5 + $0x48] sm:$0xff]  ;;  %s1641_s7 = scalar_lea.vmem %s1017_s2, 128  ;;  %p1646_p2 = scmp.lt.s32.totalorder %s1017_s2, %s1017_s2 }
  0x2b   :  { %1222 = vmatprep.subr.mxu0 %v1696_v0  ;;  %1257 = vmatprep.subr.mxu1 %v1696_v0  ;;  %v163_v12 = vld [vmem:[#allocation5 + $0xd8] sm:$0xff]  ;;  %v66_v13 = vld [vmem:[#allocation5 + $0x40] sm:$0xff]  ;;  %v162_v14 = vld [vmem:[#allocation5 + $0xd0] sm:$0xff]  ;;  %p1642_p1 = scmp.ne.s32.totalorder %s1017_s2, %s1641_s7  ;;  %p1647_p3 = scmp.lt.s32.totalorder %s1641_s7, %s1641_s7 }
  0x2c   :  { %1223 = vmatpush3.msra.mxu0 %v72_v2  ;;  %1258 = vmatpush3.msra.mxu1 %v166_v7  ;;  %v65_v15 = vld [vmem:[#allocation5 + $0x38] sm:$0xff]  ;;  %v161_v16 = vld [vmem:[#allocation5 + $0xc8] sm:$0xff]  ;;  %v64_v17 = vld [vmem:[#allocation5 + $0x30] sm:$0xff] }
  0x2d   :  { %1224 = vmatprep.subr.mxu0 %v1696_v0  ;;  %1259 = vmatprep.subr.mxu1 %v1696_v0  ;;  %v160_v18 = vld [vmem:[#allocation5 + $0xc0] sm:$0xff]  ;;  %v63_v19 = vld [vmem:[#allocation5 + $0x28] sm:$0xff]  ;;  %v159_v20 = vld [vmem:[#allocation5 + $0xb8] sm:$0xff]  ;;  %p1648_p4 = por %p1647_p3, %p1646_p2 }
  0x2e   :  { %1225 = vmatpush3.msra.mxu0 %v71_v3  ;;  %1260 = vmatpush3.msra.mxu1 %v165_v8  ;;  %v62_v21 = vld [vmem:[#allocation5 + $0x20] sm:$0xff]  ;;  %v158_v22 = vld [vmem:[#allocation5 + $0xb0] sm:$0xff]  ;;  %v61_v23 = vld [vmem:[#allocation5 + $0x18] sm:$0xff] }
  0x2f   :  { %1226 = vmatprep.subr.mxu0 %v1696_v0  ;;  %1261 = vmatprep.subr.mxu1 %v1696_v0  ;;  %v157_v24 = vld [vmem:[#allocation5 + $0xa8] sm:$0xff]  ;;  %v60_v25 = vld [vmem:[#allocation5 + $0x10] sm:$0xff]  ;;  %v156_v26 = vld [vmem:[#allocation5 + $0xa0] sm:$0xff]  ;;  %p1649_p5 = pnand %p1648_p4, %p1642_p1 }
  0x30   :  { %1227 = vmatpush3.msra.mxu0 %v70_v4  ;;  %1262 = vmatpush3.msra.mxu1 %v164_v10  ;;  %v59_v27 = vld [vmem:[#allocation5 + $0x8] sm:$0xff]  ;;  %v155_v28 = vld [vmem:[#allocation5 + $0x98] sm:$0xff]  ;;  %v58_v29 = vld [vmem:[#allocation5] sm:$0xff] }
  0x31   :  { %1228 = vmatprep.subr.mxu0 %v1696_v0  ;;  %1263 = vmatprep.subr.mxu1 %v1696_v0  ;;  %v1765_v30 = vld [vmem:[#allocation2] sm:$0xff]  ;;  %v154_v31 = vld [vmem:[#allocation5 + $0x90] sm:$0xff]  ;;  %v153_v32 = vld [vmem:[#allocation5 + $0x88] sm:$0xff] }
  0x32   :  { %1229 = vmatpush3.msra.mxu0 %v69_v6  ;;  %1264 = vmatpush3.msra.mxu1 %v163_v12  ;;  %v152_v33 = vld [vmem:[#allocation5 + $0x80] sm:$0xff]  ;;  %v262_v34 = vld [vmem:[#allocation5 + $0x178] sm:$0xff]  ;;  %v261_v35 = vld [vmem:[#allocation5 + $0x170] sm:$0xff] }
  0x33   :  { %1230 = vmatprep.subr.mxu0 %v1696_v0  ;;  %1265 = vmatprep.subr.mxu1 %v1696_v0  ;;  %v260_v36 = vld [vmem:[#allocation5 + $0x168] sm:$0xff]  ;;  %v259_v37 = vld [vmem:[#allocation5 + $0x160] sm:$0xff]  ;;  %v258_v38 = vld [vmem:[#allocation5 + $0x158] sm:$0xff] }
  0x34   :  { %1231 = vmatpush3.msra.mxu0 %v68_v9  ;;  %1266 = vmatpush3.msra.mxu1 %v162_v14  ;;  %v257_v39 = vld [vmem:[#allocation5 + $0x150] sm:$0xff]  ;;  %v256_v40 = vld [vmem:[#allocation5 + $0x148] sm:$0xff]  ;;  %v255_v41 = vld [vmem:[#allocation5 + $0x140] sm:$0xff] }
  0x35   :  { %1232 = vmatprep.subr.mxu0 %v1696_v0  ;;  %1267 = vmatprep.subr.mxu1 %v1696_v0  ;;  %v254_v42 = vld [vmem:[#allocation5 + $0x138] sm:$0xff]  ;;  %v253_v43 = vld [vmem:[#allocation5 + $0x130] sm:$0xff]  ;;  %v252_v44 = vld [vmem:[#allocation5 + $0x128] sm:$0xff] }
  0x36   :  { %1233 = vmatpush3.msra.mxu0 %v67_v11  ;;  %1268 = vmatpush3.msra.mxu1 %v161_v16  ;;  %v251_v45 = vld [vmem:[#allocation5 + $0x120] sm:$0xff]  ;;  %v250_v46 = vld [vmem:[#allocation5 + $0x118] sm:$0xff]  ;;  %v249_v47 = vld [vmem:[#allocation5 + $0x110] sm:$0xff] }
  0x37   :  { %1234 = vmatprep.subr.mxu0 %v1696_v0  ;;  %1269 = vmatprep.subr.mxu1 %v1696_v0  ;;  %v248_v48 = vld [vmem:[#allocation5 + $0x108] sm:$0xff]  ;;  %v1040_v49 = vld [vmem:[#allocation7] ss:$0 sm:$0xff]  ;;  %v357_v54 = vld [vmem:[#allocation5 + $0x1f8] sm:$0xff] }
  0x38   :  { %1235 = vmatpush3.msra.mxu0 %v66_v13  ;;  %1270 = vmatpush3.msra.mxu1 %v160_v18  ;;  %v247_v53 = vld [vmem:[#allocation5 + $0x100] sm:$0xff]  ;;  %v356_v55 = vld [vmem:[#allocation5 + $0x1f0] sm:$0xff]  ;;  %v355_v56 = vld [vmem:[#allocation5 + $0x1e8] sm:$0xff] }
  0x39   :  { %1236 = vmatprep.subr.mxu0 %v1696_v0  ;;  %1271 = vmatprep.subr.mxu1 %v1696_v0  ;;  %v354_v57 = vld [vmem:[#allocation5 + $0x1e0] sm:$0xff]  ;;  %v353_v58 = vld [vmem:[#allocation5 + $0x1d8] sm:$0xff]  ;;  %v352_v59 = vld [vmem:[#allocation5 + $0x1d0] sm:$0xff] }
  0x3a   :  { %1237 = vmatpush3.msra.mxu0 %v65_v15  ;;  %1272 = vmatpush3.msra.mxu1 %v159_v20  ;;  %v351_v60 = vld [vmem:[#allocation5 + $0x1c8] sm:$0xff]  ;;  %v350_v61 = vld [vmem:[#allocation5 + $0x1c0] sm:$0xff]  ;;  %v349_v62 = vld [vmem:[#allocation5 + $0x1b8] sm:$0xff] }
  0x3b   :  { %1238 = vmatprep.subr.mxu0 %v1696_v0  ;;  %1273 = vmatprep.subr.mxu1 %v1696_v0  ;;  %v348_v63 = vld [vmem:[#allocation5 + $0x1b0] sm:$0xff]  ;;  %v347_v1 = vld [vmem:[#allocation5 + $0x1a8] sm:$0xff]  ;;  %v346_v2 = vld [vmem:[#allocation5 + $0x1a0] sm:$0xff] }
  0x3c   :  { %1239 = vmatpush3.msra.mxu0 %v64_v17  ;;  %1274 = vmatpush3.msra.mxu1 %v158_v22  ;;  %v345_v3 = vld [vmem:[#allocation5 + $0x198] sm:$0xff]  ;;  %v344_v4 = vld [vmem:[#allocation5 + $0x190] sm:$0xff]  ;;  %v343_v5 = vld [vmem:[#allocation5 + $0x188] sm:$0xff] }
  0x3d   :  { %1240 = vmatprep.subr.mxu0 %v1696_v0  ;;  %1275 = vmatprep.subr.mxu1 %v1696_v0  ;;  %v1041_v6 = vld [vmem:[#allocation7 + $0x1] ss:$0 sm:$0xff]  ;;  %v452_v9 = vld [vmem:[#allocation5 + $0x278] sm:$0xff]  ;;  %v451_v11 = vld [vmem:[#allocation5 + $0x270] sm:$0xff] }
  0x3e   :  { %1241 = vmatpush3.msra.mxu0 %v63_v19  ;;  %1276 = vmatpush3.msra.mxu1 %v157_v24  ;;  %v450_v12 = vld [vmem:[#allocation5 + $0x268] sm:$0xff]  ;;  %v449_v13 = vld [vmem:[#allocation5 + $0x260] sm:$0xff]  ;;  %v448_v14 = vld [vmem:[#allocation5 + $0x258] sm:$0xff] }
  0x3f   :  { %1242 = vmatprep.subr.mxu0 %v1696_v0  ;;  %1277 = vmatprep.subr.mxu1 %v1696_v0  ;;  %v447_v15 = vld [vmem:[#allocation5 + $0x250] sm:$0xff]  ;;  %v446_v16 = vld [vmem:[#allocation5 + $0x248] sm:$0xff]  ;;  %v445_v17 = vld [vmem:[#allocation5 + $0x240] sm:$0xff] }
  0x40   :  { %1243 = vmatpush3.msra.mxu0 %v62_v21  ;;  %1278 = vmatpush3.msra.mxu1 %v156_v26  ;;  %v444_v18 = vld [vmem:[#allocation5 + $0x238] sm:$0xff]  ;;  %v443_v19 = vld [vmem:[#allocation5 + $0x230] sm:$0xff]  ;;  %v442_v20 = vld [vmem:[#allocation5 + $0x228] sm:$0xff] }
  0x41   :  { %1244 = vmatprep.subr.mxu0 %v1696_v0  ;;  %1279 = vmatprep.subr.mxu1 %v1696_v0  ;;  %v441_v21 = vld [vmem:[#allocation5 + $0x220] sm:$0xff]  ;;  %v440_v22 = vld [vmem:[#allocation5 + $0x218] sm:$0xff]  ;;  %v438_v24 = vld [vmem:[#allocation5 + $0x208] sm:$0xff] }
  0x42   :  { %1245 = vmatpush3.msra.mxu0 %v61_v23  ;;  %1280 = vmatpush3.msra.mxu1 %v155_v28  ;;  %v439_v23 = vld [vmem:[#allocation5 + $0x210] sm:$0xff]  ;;  %v342_v26 = vld [vmem:[#allocation5 + $0x180] sm:$0xff] }
  0x43   :  { %1246 = vmatprep.subr.mxu0 %v1696_v0  ;;  %1281 = vmatprep.subr.mxu1 %v1696_v0 }
  0x44   :  { %1247 = vmatpush3.msra.mxu0 %v60_v25  ;;  %1282 = vmatpush3.msra.mxu1 %v154_v31  ;;  %v437_v25 = vld [vmem:[#allocation5 + $0x200] sm:$0xff]  ;;  %v547_v31 = vld [vmem:[#allocation5 + $0x2f8] sm:$0xff] }
  0x45   :  { %1248 = vmatprep.subr.mxu0 %v1696_v0  ;;  %1283 = vmatprep.subr.mxu1 %v1696_v0 }
  0x46   :  { %1249 = vmatpush3.msra.mxu0 %v59_v27  ;;  %1284 = vmatpush3.msra.mxu1 %v153_v32  ;;  %v1042_v27 = vld [vmem:[#allocation7 + $0x2] ss:$0 sm:$0xff] }
  0x47   :  { %1250 = vmatprep.subr.mxu0 %v1696_v0  ;;  %1285 = vmatprep.subr.mxu1 %v1696_v0 }
  0x48   :  { %1251 = vmatpush3.msra.mxu0 %v58_v29  ;;  %1286 = vmatpush3.msra.mxu1 %v152_v33  ;;  %v546_v33 = vld [vmem:[#allocation5 + $0x2f0] sm:$0xff] }
  0x49   :  { %1253 = vmatmul.mubr.f32.vlgmr.msra.gmra.mxu0 %v1765_v30  ;;  %1290 = vmatprep.subr.mxu0 %v1696_v0 }
  0x4a   :  { %1322 = vmatprep.mubr.msk.f32.mxu0 %vm1697_vm0, %v1696_v0  ;;  %1325 = vmatprep.subr.mxu1 %v1696_v0 }
  0x4b   :  { %1291 = vmatpush3.msra.mxu0 %v262_v34  ;;  %v544_v34 = vld [vmem:[#allocation5 + $0x2e0] sm:$0xff] }
  0x4c   :  { %1292 = vmatprep.subr.mxu0 %v1696_v0 }
  0x4d   :  { %1293 = vmatpush3.msra.mxu0 %v261_v35  ;;  %v543_v35 = vld [vmem:[#allocation5 + $0x2d8] sm:$0xff] }
  0x4e   :  { %1294 = vmatprep.subr.mxu0 %v1696_v0 }
  0x4f   :  { %1295 = vmatpush3.msra.mxu0 %v260_v36  ;;  %v542_v36 = vld [vmem:[#allocation5 + $0x2d0] sm:$0xff] }
  0x50   :  { %1296 = vmatprep.subr.mxu0 %v1696_v0 }
  0x51   :  { %1297 = vmatpush3.msra.mxu0 %v259_v37  ;;  %v541_v37 = vld [vmem:[#allocation5 + $0x2c8] sm:$0xff] }
  0x52   :  { %1298 = vmatprep.subr.mxu0 %v1696_v0 }
  0x53   :  { %1299 = vmatpush3.msra.mxu0 %v258_v38  ;;  %v540_v38 = vld [vmem:[#allocation5 + $0x2c0] sm:$0xff] }
  0x54   :  { %1300 = vmatprep.subr.mxu0 %v1696_v0 }
  0x55   :  { %1301 = vmatpush3.msra.mxu0 %v257_v39  ;;  %v539_v39 = vld [vmem:[#allocation5 + $0x2b8] sm:$0xff] }
  0x56   :  { %1302 = vmatprep.subr.mxu0 %v1696_v0 }
  0x57   :  { %1303 = vmatpush3.msra.mxu0 %v256_v40  ;;  %v538_v40 = vld [vmem:[#allocation5 + $0x2b0] sm:$0xff] }
  0x58   :  { %1304 = vmatprep.subr.mxu0 %v1696_v0 }
  0x59   :  { %1305 = vmatpush3.msra.mxu0 %v255_v41  ;;  %v537_v41 = vld [vmem:[#allocation5 + $0x2a8] sm:$0xff] }
  0x5a   :  { %1306 = vmatprep.subr.mxu0 %v1696_v0 }
  0x5b   :  { %1307 = vmatpush3.msra.mxu0 %v254_v42  ;;  %v536_v42 = vld [vmem:[#allocation5 + $0x2a0] sm:$0xff] }
  0x5c   :  { %1308 = vmatprep.subr.mxu0 %v1696_v0 }
  0x5d   :  { %1309 = vmatpush3.msra.mxu0 %v253_v43  ;;  %v535_v43 = vld [vmem:[#allocation5 + $0x298] sm:$0xff] }
  0x5e   :  { %1310 = vmatprep.subr.mxu0 %v1696_v0 }
  0x5f   :  { %1311 = vmatpush3.msra.mxu0 %v252_v44  ;;  %v534_v44 = vld [vmem:[#allocation5 + $0x290] sm:$0xff] }
  0x60   :  { %1312 = vmatprep.subr.mxu0 %v1696_v0 }
  0x61   :  { %1313 = vmatpush3.msra.mxu0 %v251_v45  ;;  %v533_v45 = vld [vmem:[#allocation5 + $0x288] sm:$0xff] }
  0x62   :  { %1314 = vmatprep.subr.mxu0 %v1696_v0 }
  0x63   :  { %1315 = vmatpush3.msra.mxu0 %v250_v46  ;;  %v1044_v46 = vld [vmem:[#allocation7 + $0x4] ss:$0 sm:$0xff] }
  0x64   :  { %1316 = vmatprep.subr.mxu0 %v1696_v0 }
  0x65   :  { %1317 = vmatpush3.msra.mxu0 %v249_v47  ;;  %v532_v47 = vld [vmem:[#allocation5 + $0x280] sm:$0xff] }
  0x66   :  { %1318 = vmatprep.subr.mxu0 %v1696_v0 }
  0x67   :  { %1319 = vmatpush3.msra.mxu0 %v248_v48 }
  0x68   :  { %1320 = vmatprep.subr.mxu0 %v1696_v0 }
  0x69   :  { %1321 = vmatpush3.msra.mxu0 %v247_v53  ;;  %v641_v53 = vld [vmem:[#allocation5 + $0x368] sm:$0xff] }
  0x6a   :  { %1360 = vmatprep.subr.mxu0 %v1696_v0 }
 0x109   :  { %v147_v50 = vpop.f32.mrf.mxu0 }
 0x10a   :  { %v148_v51 = vadd.f32 %v1040_v49, %v147_v50 }
 0x10b   :  { %v1254_v52 = vpop.f32.mrf.mxu0 }
 0x10c   :  { %1288 = vmatmul.mubr.f32.vlgmr.msra.gmra.mxu1 %v148_v51  ;;  %v643_v51 = vld [vmem:[#allocation5 + $0x378] sm:$0xff]  ;;  %v642_v52 = vld [vmem:[#allocation5 + $0x370] sm:$0xff] }
 0x10d   :  { %1357 = vmatprep.mubr.msk.f32.mxu1 %vm1697_vm0, %v1696_v0  ;;  %1326 = vmatpush3.msra.mxu1 %v357_v54  ;;  %v640_v54 = vld [vmem:[#allocation5 + $0x360] sm:$0xff] }
 0x10e   :  { %1327 = vmatprep.subr.mxu1 %v1696_v0 }
 0x10f   :  { %1328 = vmatpush3.msra.mxu1 %v356_v55  ;;  %v639_v55 = vld [vmem:[#allocation5 + $0x358] sm:$0xff] }
 0x110   :  { %1329 = vmatprep.subr.mxu1 %v1696_v0 }
 0x111   :  { %1330 = vmatpush3.msra.mxu1 %v355_v56  ;;  %v638_v56 = vld [vmem:[#allocation5 + $0x350] sm:$0xff] }
 0x112   :  { %1331 = vmatprep.subr.mxu1 %v1696_v0 }
 0x113   :  { %1332 = vmatpush3.msra.mxu1 %v354_v57  ;;  %v637_v57 = vld [vmem:[#allocation5 + $0x348] sm:$0xff] }
 0x114   :  { %1333 = vmatprep.subr.mxu1 %v1696_v0 }
 0x115   :  { %1334 = vmatpush3.msra.mxu1 %v353_v58  ;;  %v636_v58 = vld [vmem:[#allocation5 + $0x340] sm:$0xff] }
 0x116   :  { %1335 = vmatprep.subr.mxu1 %v1696_v0 }
 0x117   :  { %1336 = vmatpush3.msra.mxu1 %v352_v59  ;;  %v635_v59 = vld [vmem:[#allocation5 + $0x338] sm:$0xff] }
 0x118   :  { %1337 = vmatprep.subr.mxu1 %v1696_v0 }
 0x119   :  { %1338 = vmatpush3.msra.mxu1 %v351_v60  ;;  %v634_v60 = vld [vmem:[#allocation5 + $0x330] sm:$0xff] }
 0x11a   :  { %1339 = vmatprep.subr.mxu1 %v1696_v0 }
 0x11b   :  { %1340 = vmatpush3.msra.mxu1 %v350_v61  ;;  %v633_v61 = vld [vmem:[#allocation5 + $0x328] sm:$0xff] }
 0x11c   :  { %1341 = vmatprep.subr.mxu1 %v1696_v0 }
 0x11d   :  { %1342 = vmatpush3.msra.mxu1 %v349_v62  ;;  %v632_v62 = vld [vmem:[#allocation5 + $0x320] sm:$0xff] }
 0x11e   :  { %1343 = vmatprep.subr.mxu1 %v1696_v0 }
 0x11f   :  { %1344 = vmatpush3.msra.mxu1 %v348_v63  ;;  %v631_v63 = vld [vmem:[#allocation5 + $0x318] sm:$0xff] }
 0x120   :  { %1345 = vmatprep.subr.mxu1 %v1696_v0 }
 0x121   :  { %1346 = vmatpush3.msra.mxu1 %v347_v1  ;;  %v630_v1 = vld [vmem:[#allocation5 + $0x310] sm:$0xff] }
 0x122   :  { %1347 = vmatprep.subr.mxu1 %v1696_v0 }
 0x123   :  { %1348 = vmatpush3.msra.mxu1 %v346_v2  ;;  %v629_v2 = vld [vmem:[#allocation5 + $0x308] sm:$0xff] }
 0x124   :  { %1349 = vmatprep.subr.mxu1 %v1696_v0 }
 0x125   :  { %1350 = vmatpush3.msra.mxu1 %v345_v3  ;;  %v628_v3 = vld [vmem:[#allocation5 + $0x300] sm:$0xff] }
 0x126   :  { %1351 = vmatprep.subr.mxu1 %v1696_v0 }
 0x127   :  { %1352 = vmatpush3.msra.mxu1 %v344_v4  ;;  %v738_v4 = vld [vmem:[#allocation5 + $0x3f8] sm:$0xff] }
 0x128   :  { %1353 = vmatprep.subr.mxu1 %v1696_v0 }
 0x129   :  { %1354 = vmatpush3.msra.mxu1 %v343_v5  ;;  %v737_v5 = vld [vmem:[#allocation5 + $0x3f0] sm:$0xff] }
 0x12a   :  { %1355 = vmatprep.subr.mxu1 %v1696_v0 }
 0x12b   :  { %1356 = vmatpush3.msra.mxu1 %v342_v26 }
 0x12c   :  { %1395 = vmatprep.subr.mxu1 %v1696_v0 }
 0x1cc   :  { %v242_v7 = vpop.f32.mrf.mxu1 }
 0x1cd   :  { %v243_v8 = vadd.f32 %v1041_v6, %v242_v7  ;;  %v736_v6 = vld [vmem:[#allocation5 + $0x3e8] sm:$0xff]  ;;  %v735_v7 = vld [vmem:[#allocation5 + $0x3e0] sm:$0xff] }
 0x1ce   :  { %v1289_v10 = vpop.f32.mrf.mxu1 }
 0x1cf   :  { %1323 = vmatmul.mubr.f32.vlgmr.msra.gmra.mxu0 %v243_v8  ;;  %v734_v8 = vld [vmem:[#allocation5 + $0x3d8] sm:$0xff]  ;;  %v732_v10 = vld [vmem:[#allocation5 + $0x3c8] sm:$0xff] }
 0x1d0   :  { %1361 = vmatpush3.msra.mxu0 %v452_v9  ;;  %1392 = vmatprep.mubr.msk.f32.mxu0 %vm1697_vm0, %v1696_v0  ;;  %v733_v9 = vld [vmem:[#allocation5 + $0x3d0] sm:$0xff] }
 0x1d1   :  { %1362 = vmatprep.subr.mxu0 %v1696_v0 }
 0x1d2   :  { %1363 = vmatpush3.msra.mxu0 %v451_v11  ;;  %v731_v11 = vld [vmem:[#allocation5 + $0x3c0] sm:$0xff] }
 0x1d3   :  { %1364 = vmatprep.subr.mxu0 %v1696_v0 }
 0x1d4   :  { %1365 = vmatpush3.msra.mxu0 %v450_v12  ;;  %v730_v12 = vld [vmem:[#allocation5 + $0x3b8] sm:$0xff] }
 0x1d5   :  { %1366 = vmatprep.subr.mxu0 %v1696_v0 }
 0x1d6   :  { %1367 = vmatpush3.msra.mxu0 %v449_v13  ;;  %v729_v13 = vld [vmem:[#allocation5 + $0x3b0] sm:$0xff] }
 0x1d7   :  { %1368 = vmatprep.subr.mxu0 %v1696_v0 }
 0x1d8   :  { %1369 = vmatpush3.msra.mxu0 %v448_v14  ;;  %v728_v14 = vld [vmem:[#allocation5 + $0x3a8] sm:$0xff] }
 0x1d9   :  { %1370 = vmatprep.subr.mxu0 %v1696_v0 }
 0x1da   :  { %1371 = vmatpush3.msra.mxu0 %v447_v15  ;;  %v727_v15 = vld [vmem:[#allocation5 + $0x3a0] sm:$0xff] }
 0x1db   :  { %1372 = vmatprep.subr.mxu0 %v1696_v0 }
 0x1dc   :  { %1373 = vmatpush3.msra.mxu0 %v446_v16  ;;  %v726_v16 = vld [vmem:[#allocation5 + $0x398] sm:$0xff] }
 0x1dd   :  { %1374 = vmatprep.subr.mxu0 %v1696_v0 }
 0x1de   :  { %1375 = vmatpush3.msra.mxu0 %v445_v17  ;;  %v725_v17 = vld [vmem:[#allocation5 + $0x390] sm:$0xff] }
 0x1df   :  { %1376 = vmatprep.subr.mxu0 %v1696_v0 }
 0x1e0   :  { %1377 = vmatpush3.msra.mxu0 %v444_v18 }
 0x1e1   :  { %1378 = vmatprep.subr.mxu0 %v1696_v0 }
 0x1e2   :  { %1379 = vmatpush3.msra.mxu0 %v443_v19 }
 0x1e3   :  { %1380 = vmatprep.subr.mxu0 %v1696_v0 }
 0x1e4   :  { %1381 = vmatpush3.msra.mxu0 %v442_v20  ;;  %v1043_v20 = vld [vmem:[#allocation7 + $0x3] ss:$0 sm:$0xff] }
 0x1e5   :  { %1382 = vmatprep.subr.mxu0 %v1696_v0 }
 0x1e6   :  { %1383 = vmatpush3.msra.mxu0 %v441_v21  ;;  %v1045_v21 = vld [vmem:[#allocation7 + $0x5] ss:$0 sm:$0xff] }
 0x1e7   :  { %1384 = vmatprep.subr.mxu0 %v1696_v0 }
 0x1e8   :  { %1385 = vmatpush3.msra.mxu0 %v440_v22 }
 0x1e9   :  { %1386 = vmatprep.subr.mxu0 %v1696_v0 }
 0x1ea   :  { %1387 = vmatpush3.msra.mxu0 %v439_v23 }
 0x1eb   :  { %1388 = vmatprep.subr.mxu0 %v1696_v0 }
 0x1ec   :  { %1389 = vmatpush3.msra.mxu0 %v438_v24 }
 0x1ed   :  { %1390 = vmatprep.subr.mxu0 %v1696_v0 }
 0x1ee   :  { %1391 = vmatpush3.msra.mxu0 %v437_v25 }
 0x1ef   :  { %1393 = vmatmul.mubr.f32.vlgmr.msra.gmra.mxu0 %v1765_v30  ;;  %1430 = vmatprep.subr.mxu0 %v1696_v0  ;;  %v545_v30 = vld [vmem:[#allocation5 + $0x2e8] sm:$0xff] }
 0x1f0   :  { %1462 = vmatprep.mubr.msk.f32.mxu0 %vm1697_vm0, %v1696_v0  ;;  %1431 = vmatpush3.msra.mxu0 %v643_v51  ;;  %v926_v51 = vld [vmem:[#allocation5 + $0x4e8] sm:$0xff] }
 0x1f1   :  { %1432 = vmatprep.subr.mxu0 %v1696_v0 }
 0x1f2   :  { %1433 = vmatpush3.msra.mxu0 %v642_v52  ;;  %v925_v52 = vld [vmem:[#allocation5 + $0x4e0] sm:$0xff] }
 0x1f3   :  { %1434 = vmatprep.subr.mxu0 %v1696_v0 }
 0x1f4   :  { %1435 = vmatpush3.msra.mxu0 %v641_v53  ;;  %v924_v53 = vld [vmem:[#allocation5 + $0x4d8] sm:$0xff] }
 0x1f5   :  { %1436 = vmatprep.subr.mxu0 %v1696_v0 }
 0x1f6   :  { %1437 = vmatpush3.msra.mxu0 %v640_v54  ;;  %v923_v54 = vld [vmem:[#allocation5 + $0x4d0] sm:$0xff] }
 0x1f7   :  { %1438 = vmatprep.subr.mxu0 %v1696_v0 }
 0x1f8   :  { %1439 = vmatpush3.msra.mxu0 %v639_v55  ;;  %v922_v55 = vld [vmem:[#allocation5 + $0x4c8] sm:$0xff] }
 0x1f9   :  { %1440 = vmatprep.subr.mxu0 %v1696_v0 }
 0x1fa   :  { %1441 = vmatpush3.msra.mxu0 %v638_v56  ;;  %v921_v56 = vld [vmem:[#allocation5 + $0x4c0] sm:$0xff] }
 0x1fb   :  { %1442 = vmatprep.subr.mxu0 %v1696_v0 }
 0x1fc   :  { %1443 = vmatpush3.msra.mxu0 %v637_v57  ;;  %v920_v57 = vld [vmem:[#allocation5 + $0x4b8] sm:$0xff] }
 0x1fd   :  { %1444 = vmatprep.subr.mxu0 %v1696_v0 }
 0x1fe   :  { %1445 = vmatpush3.msra.mxu0 %v636_v58  ;;  %v919_v58 = vld [vmem:[#allocation5 + $0x4b0] sm:$0xff] }
 0x1ff   :  { %1446 = vmatprep.subr.mxu0 %v1696_v0 }
 0x200   :  { %1447 = vmatpush3.msra.mxu0 %v635_v59  ;;  %v918_v59 = vld [vmem:[#allocation5 + $0x4a8] sm:$0xff] }
 0x201   :  { %1448 = vmatprep.subr.mxu0 %v1696_v0 }
 0x202   :  { %1449 = vmatpush3.msra.mxu0 %v634_v60  ;;  %v917_v60 = vld [vmem:[#allocation5 + $0x4a0] sm:$0xff] }
 0x203   :  { %1450 = vmatprep.subr.mxu0 %v1696_v0 }
 0x204   :  { %1451 = vmatpush3.msra.mxu0 %v633_v61  ;;  %v916_v61 = vld [vmem:[#allocation5 + $0x498] sm:$0xff] }
 0x205   :  { %1452 = vmatprep.subr.mxu0 %v1696_v0 }
 0x206   :  { %1453 = vmatpush3.msra.mxu0 %v632_v62  ;;  %v915_v62 = vld [vmem:[#allocation5 + $0x490] sm:$0xff] }
 0x207   :  { %1454 = vmatprep.subr.mxu0 %v1696_v0 }
 0x208   :  { %1455 = vmatpush3.msra.mxu0 %v631_v63  ;;  %v1047_v63 = vld [vmem:[#allocation7 + $0x7] ss:$0 sm:$0xff] }
 0x209   :  { %1456 = vmatprep.subr.mxu0 %v1696_v0 }
 0x20a   :  { %1457 = vmatpush3.msra.mxu0 %v630_v1 }
 0x20b   :  { %1458 = vmatprep.subr.mxu0 %v1696_v0 }
 0x20c   :  { %1459 = vmatpush3.msra.mxu0 %v629_v2 }
 0x20d   :  { %1460 = vmatprep.subr.mxu0 %v1696_v0 }
 0x20e   :  { %1461 = vmatpush3.msra.mxu0 %v628_v3 }
 0x20f   :  { %1500 = vmatprep.subr.mxu0 %v1696_v0 }
 0x28f   :  { %v337_v28 = vpop.f32.mrf.mxu0 }
 0x290   :  { %v338_v29 = vadd.f32 %v1042_v27, %v337_v28  ;;  %v724_v27 = vld [vmem:[#allocation5 + $0x388] sm:$0xff]  ;;  %v723_v28 = vld [vmem:[#allocation5 + $0x380] sm:$0xff] }
 0x291   :  { %v1324_v32 = vpop.f32.mrf.mxu0 }
 0x292   :  { %1358 = vmatmul.mubr.f32.vlgmr.msra.gmra.mxu1 %v338_v29  ;;  %v833_v29 = vld [vmem:[#allocation5 + $0x478] sm:$0xff]  ;;  %v831_v32 = vld [vmem:[#allocation5 + $0x468] sm:$0xff] }
 0x293   :  { %1396 = vmatpush3.msra.mxu1 %v547_v31  ;;  %1427 = vmatprep.mubr.msk.f32.mxu1 %vm1697_vm0, %v1696_v0  ;;  %v832_v31 = vld [vmem:[#allocation5 + $0x470] sm:$0xff] }
 0x294   :  { %1397 = vmatprep.subr.mxu1 %v1696_v0 }
 0x295   :  { %1398 = vmatpush3.msra.mxu1 %v546_v33  ;;  %v830_v33 = vld [vmem:[#allocation5 + $0x460] sm:$0xff] }
 0x296   :  { %1399 = vmatprep.subr.mxu1 %v1696_v0 }
 0x297   :  { %1400 = vmatpush3.msra.mxu1 %v545_v30  ;;  %v829_v30 = vld [vmem:[#allocation5 + $0x458] sm:$0xff] }
 0x298   :  { %1401 = vmatprep.subr.mxu1 %v1696_v0 }
 0x299   :  { %1402 = vmatpush3.msra.mxu1 %v544_v34  ;;  %v828_v34 = vld [vmem:[#allocation5 + $0x450] sm:$0xff] }
 0x29a   :  { %1403 = vmatprep.subr.mxu1 %v1696_v0 }
 0x29b   :  { %1404 = vmatpush3.msra.mxu1 %v543_v35  ;;  %v827_v35 = vld [vmem:[#allocation5 + $0x448] sm:$0xff] }
 0x29c   :  { %1405 = vmatprep.subr.mxu1 %v1696_v0 }
 0x29d   :  { %1406 = vmatpush3.msra.mxu1 %v542_v36  ;;  %v826_v36 = vld [vmem:[#allocation5 + $0x440] sm:$0xff] }
 0x29e   :  { %1407 = vmatprep.subr.mxu1 %v1696_v0 }
 0x29f   :  { %1408 = vmatpush3.msra.mxu1 %v541_v37  ;;  %v825_v37 = vld [vmem:[#allocation5 + $0x438] sm:$0xff] }
 0x2a0   :  { %1409 = vmatprep.subr.mxu1 %v1696_v0 }
 0x2a1   :  { %1410 = vmatpush3.msra.mxu1 %v540_v38  ;;  %v824_v38 = vld [vmem:[#allocation5 + $0x430] sm:$0xff] }
 0x2a2   :  { %1411 = vmatprep.subr.mxu1 %v1696_v0 }
 0x2a3   :  { %1412 = vmatpush3.msra.mxu1 %v539_v39  ;;  %v823_v39 = vld [vmem:[#allocation5 + $0x428] sm:$0xff] }
 0x2a4   :  { %1413 = vmatprep.subr.mxu1 %v1696_v0 }
 0x2a5   :  { %1414 = vmatpush3.msra.mxu1 %v538_v40  ;;  %v822_v40 = vld [vmem:[#allocation5 + $0x420] sm:$0xff] }
 0x2a6   :  { %1415 = vmatprep.subr.mxu1 %v1696_v0 }
 0x2a7   :  { %1416 = vmatpush3.msra.mxu1 %v537_v41  ;;  %v821_v41 = vld [vmem:[#allocation5 + $0x418] sm:$0xff] }
 0x2a8   :  { %1417 = vmatprep.subr.mxu1 %v1696_v0 }
 0x2a9   :  { %1418 = vmatpush3.msra.mxu1 %v536_v42  ;;  %v820_v42 = vld [vmem:[#allocation5 + $0x410] sm:$0xff] }
 0x2aa   :  { %1419 = vmatprep.subr.mxu1 %v1696_v0 }
 0x2ab   :  { %1420 = vmatpush3.msra.mxu1 %v535_v43  ;;  %v1046_v43 = vld [vmem:[#allocation7 + $0x6] ss:$0 sm:$0xff] }
 0x2ac   :  { %1421 = vmatprep.subr.mxu1 %v1696_v0 }
 0x2ad   :  { %1422 = vmatpush3.msra.mxu1 %v534_v44 }
 0x2ae   :  { %1423 = vmatprep.subr.mxu1 %v1696_v0 }
 0x2af   :  { %v527_v48 = vpop.f32.mrf.mxu0  ;;  %1424 = vmatpush3.msra.mxu1 %v533_v45 }
 0x2b0   :  { %v528_v49 = vadd.f32 %v1044_v46, %v527_v48  ;;  %1425 = vmatprep.subr.mxu1 %v1696_v0  ;;  %v818_v48 = vld [vmem:[#allocation5 + $0x400] sm:$0xff] }
 0x2b1   :  { %v1394_v50 = vpop.f32.mrf.mxu0  ;;  %1426 = vmatpush3.msra.mxu1 %v532_v47  ;;  %v819_v47 = vld [vmem:[#allocation5 + $0x408] sm:$0xff] }
 0x2b2   :  { %1428 = vmatmul.mubr.f32.vlgmr.msra.gmra.mxu1 %v528_v49  ;;  %1465 = vmatprep.subr.mxu1 %v1696_v0  ;;  %v928_v49 = vld [vmem:[#allocation5 + $0x4f8] sm:$0xff]  ;;  %v927_v50 = vld [vmem:[#allocation5 + $0x4f0] sm:$0xff] }
 0x2b3   :  { %1497 = vmatprep.mubr.msk.f32.mxu1 %vm1697_vm0, %v1696_v0  ;;  %1466 = vmatpush3.msra.mxu1 %v738_v4  ;;  %v914_v4 = vld [vmem:[#allocation5 + $0x488] sm:$0xff] }
 0x2b4   :  { %1467 = vmatprep.subr.mxu1 %v1696_v0 }
 0x2b5   :  { %1468 = vmatpush3.msra.mxu1 %v737_v5  ;;  %v913_v5 = vld [vmem:[#allocation5 + $0x480] sm:$0xff] }
 0x2b6   :  { %1469 = vmatprep.subr.mxu1 %v1696_v0 }
 0x2b7   :  { %1470 = vmatpush3.msra.mxu1 %v736_v6  ;;  %v1048_v6 = vld [vmem:[#allocation7 + $0x8] ss:$0 sm:$0xff] }
 0x2b8   :  { %1471 = vmatprep.subr.mxu1 %v1696_v0 }
 0x2b9   :  { %1472 = vmatpush3.msra.mxu1 %v735_v7 }
 0x2ba   :  { %1473 = vmatprep.subr.mxu1 %v1696_v0 }
 0x2bb   :  { %1474 = vmatpush3.msra.mxu1 %v734_v8 }
 0x2bc   :  { %1475 = vmatprep.subr.mxu1 %v1696_v0 }
 0x2bd   :  { %1476 = vmatpush3.msra.mxu1 %v733_v9 }
 0x2be   :  { %1477 = vmatprep.subr.mxu1 %v1696_v0 }
 0x2bf   :  { %1478 = vmatpush3.msra.mxu1 %v732_v10 }
 0x2c0   :  { %1479 = vmatprep.subr.mxu1 %v1696_v0 }
 0x2c1   :  { %1480 = vmatpush3.msra.mxu1 %v731_v11 }
 0x2c2   :  { %1481 = vmatprep.subr.mxu1 %v1696_v0 }
 0x2c3   :  { %1482 = vmatpush3.msra.mxu1 %v730_v12 }
 0x2c4   :  { %1483 = vmatprep.subr.mxu1 %v1696_v0 }
 0x2c5   :  { %1484 = vmatpush3.msra.mxu1 %v729_v13 }
 0x2c6   :  { %1485 = vmatprep.subr.mxu1 %v1696_v0 }
 0x2c7   :  { %1486 = vmatpush3.msra.mxu1 %v728_v14 }
 0x2c8   :  { %1487 = vmatprep.subr.mxu1 %v1696_v0 }
 0x2c9   :  { %1488 = vmatpush3.msra.mxu1 %v727_v15 }
 0x2ca   :  { %1489 = vmatprep.subr.mxu1 %v1696_v0 }
 0x2cb   :  { %1490 = vmatpush3.msra.mxu1 %v726_v16 }
 0x2cc   :  { %1491 = vmatprep.subr.mxu1 %v1696_v0 }
 0x2cd   :  { %1492 = vmatpush3.msra.mxu1 %v725_v17 }
 0x2ce   :  { %1493 = vmatprep.subr.mxu1 %v1696_v0 }
 0x2cf   :  { %1494 = vmatpush3.msra.mxu1 %v724_v27 }
 0x2d0   :  { %1495 = vmatprep.subr.mxu1 %v1696_v0 }
 0x2d1   :  { %1496 = vmatpush3.msra.mxu1 %v723_v28 }
 0x2d2   :  { %1535 = vmatprep.subr.mxu1 %v1696_v0 }
 0x352   :  { %v432_v18 = vpop.f32.mrf.mxu1 }
 0x353   :  { %v433_v23 = vadd.f32 %v1043_v20, %v432_v18 }
 0x354   :  { %v1359_v19 = vpop.f32.mrf.mxu1 }
 0x372   :  { %v622_v22 = vpop.f32.mrf.mxu1 }
 0x373   :  { %v623_v24 = vadd.f32 %v1045_v21, %v622_v22 }
 0x374   :  { %v1429_v25 = vpop.f32.mrf.mxu1 }
 0x375   :  { %v1882_v26 = vadd.f32 %v623_v24, %v433_v23 }
 0x377   :  { %1007 = vst [vmem:[#allocation8] sm:$0xff] %v1882_v26  ;;  %1463 = vmatmul.mubr.f32.vlgmr.msra.gmra.mxu0 %v1882_v26 }
 0x378   :  { %1532 = vmatprep.mubr.msk.f32.mxu0 %vm1697_vm0, %v1696_v0  ;;  %1501 = vmatpush3.msra.mxu0 %v833_v29 }
 0x379   :  { %1502 = vmatprep.subr.mxu0 %v1696_v0 }
 0x37a   :  { %1503 = vmatpush3.msra.mxu0 %v832_v31 }
 0x37b   :  { %1504 = vmatprep.subr.mxu0 %v1696_v0 }
 0x37c   :  { %1505 = vmatpush3.msra.mxu0 %v831_v32 }
 0x37d   :  { %1506 = vmatprep.subr.mxu0 %v1696_v0 }
 0x37e   :  { %1507 = vmatpush3.msra.mxu0 %v830_v33 }
 0x37f   :  { %1508 = vmatprep.subr.mxu0 %v1696_v0 }
 0x380   :  { %1509 = vmatpush3.msra.mxu0 %v829_v30 }
 0x381   :  { %1510 = vmatprep.subr.mxu0 %v1696_v0 }
 0x382   :  { %1511 = vmatpush3.msra.mxu0 %v828_v34 }
 0x383   :  { %1512 = vmatprep.subr.mxu0 %v1696_v0 }
 0x384   :  { %1513 = vmatpush3.msra.mxu0 %v827_v35 }
 0x385   :  { %1514 = vmatprep.subr.mxu0 %v1696_v0 }
 0x386   :  { %1515 = vmatpush3.msra.mxu0 %v826_v36 }
 0x387   :  { %1516 = vmatprep.subr.mxu0 %v1696_v0 }
 0x388   :  { %1517 = vmatpush3.msra.mxu0 %v825_v37 }
 0x389   :  { %1518 = vmatprep.subr.mxu0 %v1696_v0 }
 0x38a   :  { %1519 = vmatpush3.msra.mxu0 %v824_v38 }
 0x38b   :  { %1520 = vmatprep.subr.mxu0 %v1696_v0 }
 0x38c   :  { %1521 = vmatpush3.msra.mxu0 %v823_v39 }
 0x38d   :  { %1522 = vmatprep.subr.mxu0 %v1696_v0 }
 0x38e   :  { %1523 = vmatpush3.msra.mxu0 %v822_v40 }
 0x38f   :  { %1524 = vmatprep.subr.mxu0 %v1696_v0 }
 0x390   :  { %1525 = vmatpush3.msra.mxu0 %v821_v41 }
 0x391   :  { %1526 = vmatprep.subr.mxu0 %v1696_v0 }
 0x392   :  { %1527 = vmatpush3.msra.mxu0 %v820_v42 }
 0x393   :  { %1528 = vmatprep.subr.mxu0 %v1696_v0 }
 0x394   :  { %1529 = vmatpush3.msra.mxu0 %v819_v47 }
 0x395   :  { %1530 = vmatprep.subr.mxu0 %v1696_v0 }
 0x396   :  { %1531 = vmatpush3.msra.mxu0 %v818_v48 }
 0x437   :  { %v718_v44 = vpop.f32.mrf.mxu0 }
 0x438   :  { %v719_v45 = vadd.f32 %v1046_v43, %v718_v44 }
 0x439   :  { %v1464_v46 = vpop.f32.mrf.mxu0 }
 0x43a   :  { %1498 = vmatmul.mubr.f32.vlgmr.msra.gmra.mxu1 %v719_v45 }
 0x43b   :  { %1567 = vmatprep.mubr.msk.f32.mxu1 %vm1697_vm0, %v1696_v0  ;;  %1536 = vmatpush3.msra.mxu1 %v928_v49 }
 0x43c   :  { %1537 = vmatprep.subr.mxu1 %v1696_v0 }
 0x43d   :  { %1538 = vmatpush3.msra.mxu1 %v927_v50 }
 0x43e   :  { %1539 = vmatprep.subr.mxu1 %v1696_v0 }
 0x43f   :  { %1540 = vmatpush3.msra.mxu1 %v926_v51 }
 0x440   :  { %1541 = vmatprep.subr.mxu1 %v1696_v0 }
 0x441   :  { %1542 = vmatpush3.msra.mxu1 %v925_v52 }
 0x442   :  { %1543 = vmatprep.subr.mxu1 %v1696_v0 }
 0x443   :  { %1544 = vmatpush3.msra.mxu1 %v924_v53 }
 0x444   :  { %1545 = vmatprep.subr.mxu1 %v1696_v0 }
 0x445   :  { %1546 = vmatpush3.msra.mxu1 %v923_v54 }
 0x446   :  { %1547 = vmatprep.subr.mxu1 %v1696_v0 }
 0x447   :  { %1548 = vmatpush3.msra.mxu1 %v922_v55 }
 0x448   :  { %1549 = vmatprep.subr.mxu1 %v1696_v0 }
 0x449   :  { %1550 = vmatpush3.msra.mxu1 %v921_v56 }
 0x44a   :  { %1551 = vmatprep.subr.mxu1 %v1696_v0 }
 0x44b   :  { %1552 = vmatpush3.msra.mxu1 %v920_v57 }
 0x44c   :  { %1553 = vmatprep.subr.mxu1 %v1696_v0 }
 0x44d   :  { %1554 = vmatpush3.msra.mxu1 %v919_v58 }
 0x44e   :  { %1555 = vmatprep.subr.mxu1 %v1696_v0 }
 0x44f   :  { %1556 = vmatpush3.msra.mxu1 %v918_v59 }
 0x450   :  { %1557 = vmatprep.subr.mxu1 %v1696_v0 }
 0x451   :  { %1558 = vmatpush3.msra.mxu1 %v917_v60 }
 0x452   :  { %1559 = vmatprep.subr.mxu1 %v1696_v0 }
 0x453   :  { %1560 = vmatpush3.msra.mxu1 %v916_v61 }
 0x454   :  { %1561 = vmatprep.subr.mxu1 %v1696_v0 }
 0x455   :  { %1562 = vmatpush3.msra.mxu1 %v915_v62 }
 0x456   :  { %1563 = vmatprep.subr.mxu1 %v1696_v0 }
 0x457   :  { %1564 = vmatpush3.msra.mxu1 %v914_v4 }
 0x458   :  { %1565 = vmatprep.subr.mxu1 %v1696_v0 }
 0x459   :  { %1566 = vmatpush3.msra.mxu1 %v913_v5 }
 0x4fa   :  { %v813_v1 = vpop.f32.mrf.mxu1 }
 0x4fb   :  { %v814_v2 = vadd.f32 %v1047_v63, %v813_v1 }
 0x4fc   :  { %v1499_v3 = vpop.f32.mrf.mxu1 }
 0x4fd   :  { %1533 = vmatmul.mubr.f32.vlgmr.msra.gmra.mxu0 %v814_v2 }
 0x5bd   :  { %v908_v7 = vpop.f32.mrf.mxu0 }
 0x5be   :  { %v909_v8 = vadd.f32 %v1048_v6, %v908_v7 }
 0x5bf   :  { %v1534_v9 = vpop.f32.mrf.mxu0 }
 0x5c0   :  { %1568 = vmatmul.mubr.f32.vlgmr.msra.gmra.mxu1 %v909_v8 }
 0x5c1   :  { %1652 = shalt.err (!%p1649_p5)
}
 0x5c2   :  { %1019 = dma.vmem_to_hbm [thread:$0]  %s1017_s2, 128, %s1932_s3, [#allocation4]   ;;  %v1049_v0 = vld [vmem:[#allocation7 + $0x9] ss:$0 sm:$0xff] }
 0x5c3   :  { %s1699_s10 = smov [#allocation9]  }
 0x5c4   :  { %s1026_s11 = sshll.u32 %s1699_s10, 4  ;;  %s1027_s11 = int_to_ptr.vmem [resolvable:$true] %s1026_s11 }
 0x5c5   :  { %s1661_s12 = scalar_lea.vmem %s1027_s11, 128  ;;  %p1666_p7 = scmp.lt.s32.totalorder %s1027_s11, %s1027_s11 }
 0x5c6   :  { %p1662_p6 = scmp.ne.s32.totalorder %s1027_s11, %s1661_s12  ;;  %p1667_p8 = scmp.lt.s32.totalorder %s1661_s12, %s1661_s12 }
 0x5c8   :  { %p1668_p9 = por %p1667_p8, %p1666_p7 }
 0x5ca   :  { %p1669_p10 = pnand %p1668_p9, %p1662_p6 }
 0x680   :  { %v1003_v10 = vpop.f32.mrf.mxu1 }
 0x681   :  { %v1004_v11 = vadd.f32 %v1049_v0, %v1003_v10 }
 0x682   :  { %v1569_v12 = vpop.f32.mrf.mxu1 }
 0x683   :  { %v1008_v13 = vadd.f32 %v1004_v11, %v1882_v26 }
 0x685   :  { %1009 = vst [vmem:[#allocation9] sm:$0xff] %v1008_v13 }
 0x686   :  { %1672 = shalt.err (!%p1669_p10)
}
 0x687   :  { %1029 = dma.vmem_to_hbm [thread:$0]  %s1027_s11, 128, %s1933_s4, [#allocation10]  }
 0x688   :  { %1685 = dma.done.wait [#allocation4], 128  }
 0x689   :  { %1686 = vsyncadd [#allocation4], 4294967168 }
 0x68a   :  { %1687 = dma.done.wait [#allocation10], 128  }
 0x68b   :  { %1688 = vsyncadd [#allocation10], 4294967168 }
 0x68c   :  { %1036 = vsyncpa [#allocation3], 1 }
 0x68d   :  { %1037 = vsyncpa [#allocation6], 1 }
 0x68e   :  { %1038 = vsyncpa [#allocation4], 1 }
 0x68f   :  { %1039 = vsyncpa [#allocation10], 1 }

</bundles_post_ra>
